<compile_context>
chip_gen: v7x
topology: tpu7x:2x2x1
jax: 0.10.0
libtpu: 0.0.40
codegen_flags: <defaults>
</compile_context>

<pallas_src>
import math
import functools

import jax
import jax.numpy as jnp
from jax import lax
from jax.experimental import pallas as pl
from jax.experimental.pallas import tpu as pltpu

_SUBLANE = 8


def _round_up(x, m):
    return ((x + m - 1) // m) * m


def _sublane(dtype):
    # bf16 packs 2 rows / sublane, int8/fp8 pack 4 -> keep row tiles aligned.
    return max(_SUBLANE, 32 // jnp.dtype(dtype).itemsize)


# ----------------------------------------------------------------------------
# Pallas kernels
# ----------------------------------------------------------------------------
def _rowwise_stats(x):
    """One-pass sum / sum-of-squares -> (mean, unbiased-inv-std-reciprocal-input).

    Returns (mean, var_unbiased). Single pass over the x vregs; the two lane
    reductions are independent so the XLUs can overlap them."""
    C = x.shape[-1]
    s1 = jnp.sum(x, axis=-1, keepdims=True)
    s2 = jnp.sum(x * x, axis=-1, keepdims=True)
    mean = s1 * (1.0 / C)
    var_u = jnp.maximum((s2 - s1 * mean) * (1.0 / (C - 1)), 0.0)
    return mean, var_u


def _adanorm_kernel(x_ref, o_ref, *, eps, scale):
    x = x_ref[...].astype(jnp.float32)                 # (R, C)
    mean, var_u = _rowwise_stats(x)                    # torch .std() -> unbiased
    inv = pl.reciprocal(jnp.sqrt(var_u) + eps, approx=True)   # EUP slot
    xn = (x - mean) * inv
    # Reference: out = (xc - xc*graNorm)/(std+eps)*scale with graNorm=0.1*xc*inv
    # (re-centering mean of xc is analytically zero) == xn*scale*(1 - 0.1*xn).
    o_ref[...] = (xn * scale * (1.0 - 0.1 * xn)).astype(o_ref.dtype)


def _nowb_kernel(x_ref, o_ref, *, eps, scale):
    x = x_ref[...].astype(jnp.float32)                 # (R, C)
    mean, var_u = _rowwise_stats(x)
    inv = pl.reciprocal(jnp.sqrt(var_u) + eps, approx=True)
    o_ref[...] = ((x - mean) * inv * scale).astype(o_ref.dtype)


def _matrix_eye_kernel(x_ref, b_ref, o_ref, *, eps):
    # matrix_eye: Linear weight is the identity -> y = xn + b; no MXU, no C*C
    # weight traffic.  Pure mem-bound rowwise kernel.
    x = x_ref[...].astype(jnp.float32)
    mean, var_u = _rowwise_stats(x)
    inv = pl.reciprocal(jnp.sqrt(var_u) + eps, approx=True)
    o_ref[...] = ((x - mean) * inv + b_ref[...]).astype(o_ref.dtype)


def _matrix_kernel(x_ref, wt_ref, b_ref, o_ref, xn_ref, *, eps):
    # grid = (row_tiles, col_tiles); normalization is computed once per row
    # tile (j == 0) into the xn scratch and reused for every column tile.
    @pl.when(pl.program_id(1) == 0)
    def _():
        x = x_ref[...].astype(jnp.float32)
        mean, var_u = _rowwise_stats(x)
        inv = pl.reciprocal(jnp.sqrt(var_u) + eps, approx=True)
        xn_ref[...] = ((x - mean) * inv).astype(xn_ref.dtype)
    # nn.Linear: y = xn @ W.T + b. W.T is pre-transposed (and bf16-cast) in the
    # wrapper; f32 accumulation preserves LN-level numerics on the bf16 MXU.
    y = jnp.dot(xn_ref[...], wt_ref[...],
                preferred_element_type=jnp.float32) + b_ref[...]
    o_ref[...] = y.astype(o_ref.dtype)


def _topk_layernorm_kernel(x_ref, g_ref, b_ref, o_ref, *, eps, k):
    # Reference scatters the k-th largest value into all top-k positions and
    # the k-th smallest into all bottom-k positions == clip(x, kth_min, kth_max).
    # TODO(synk): this clip formulation assumes k <= C/2 (sigma <= 0.5); for
    # larger sigma the reference's two overlapping scatters differ.
    x = x_ref[...].astype(jnp.float32)                 # (R, C)
    R, C = x.shape
    MASK = jnp.int32(0x7FFFFFFF)
    SIGN = jnp.int32(-(2 ** 31))

    def to_key(v):
        b = pltpu.bitcast(v, jnp.int32)
        return b ^ ((b >> 31) & MASK)                  # monotone signed-int key

    key_hi = to_key(x)                                 # order of x
    key_lo = to_key(-x)                                # order of -x (kth smallest)
    kf = jnp.float32(k)
    use_mxu = C >= 128
    ones_c = jnp.ones((C, 1), jnp.bfloat16) if use_mxu else None

    def count_ge(key, cand_signed):
        mask = key >= cand_signed
        if use_mxu:
            # Exact count: 0/1 in bf16 with f32 accumulation.  Moves the lane
            # reduction off the (saturated) XLU onto the otherwise-idle MXU.
            return jnp.dot(mask.astype(jnp.bfloat16), ones_c,
                           preferred_element_type=jnp.float32)
        return jnp.sum(mask.astype(jnp.float32), axis=-1, keepdims=True)

    def body(i, carry):
        # Fused 32-step bitwise threshold search for both extremes: two
        # independent compares + counts per step co-issue on the 2-3 XLUs/MXU.
        p_hi, p_lo = carry
        bit = jnp.left_shift(jnp.int32(1), 31 - i)
        c_hi = p_hi | bit
        c_lo = p_lo | bit
        n_hi = count_ge(key_hi, c_hi ^ SIGN)
        n_lo = count_ge(key_lo, c_lo ^ SIGN)
        return (jnp.where(n_hi >= kf, c_hi, p_hi),
                jnp.where(n_lo >= kf, c_lo, p_lo))

    p0 = jnp.zeros((R, 1), jnp.int32)
    p_hi, p_lo = lax.fori_loop(0, 32, body, (p0, p0))

    def from_prefix(p):                                # key transform is involutive
        kk = p ^ SIGN
        return pltpu.bitcast(kk ^ ((kk >> 31) & MASK), jnp.float32)

    kth_max = from_prefix(p_hi)
    kth_min = -from_prefix(p_lo)
    xc = jnp.clip(x, kth_min, kth_max)

    # F.layer_norm: biased variance (divide by C), then affine.
    s1 = jnp.sum(xc, axis=-1, keepdims=True)
    s2 = jnp.sum(xc * xc, axis=-1, keepdims=True)
    mean = s1 * (1.0 / C)
    var = jnp.maximum(s2 * (1.0 / C) - mean * mean, 0.0)
    inv = lax.rsqrt(var + eps)
    y = (xc - mean) * inv * g_ref[...] + b_ref[...]
    o_ref[...] = y.astype(o_ref.dtype)


# ----------------------------------------------------------------------------
# pallas_call plumbing
# ----------------------------------------------------------------------------
def _choose_block_rows(n_rows, per_row_bytes, *, fixed_bytes=0,
                       budget_bytes=28 << 20, max_rows=2048, sub=_SUBLANE):
    """Largest row tile (multiple of `sub`) whose footprint (per_row_bytes
    already includes double-buffered DMA tiles + in-kernel working set) fits
    the budget.  When everything fits in one tile, still split into >=2 grid
    steps (DMA/compute overlap, megacore sharding).  Prefers a divisor of
    n_rows near the cap; otherwise the ragged last block is handled by Pallas
    masking (no pad/slice HBM copies)."""
    avail = max(budget_bytes - fixed_bytes, per_row_bytes * sub)
    cap = min(max_rows, avail // per_row_bytes)
    cap = max(sub, (cap // sub) * sub)
    if n_rows <= cap:
        tgt = 4 if n_rows >= 4 * sub else 2
        rb = _round_up(-(-n_rows // tgt), sub)
        return max(sub, min(rb, cap))
    rb = cap
    while rb >= max(sub, cap // 2):
        if n_rows % rb == 0:
            return rb
        rb -= sub
    return cap


def _vmem_limit(resident_bytes):
    # Resident tiles + headroom; raises v5e's 16 MiB scoped default while
    # staying well under v7x's 64 MiB physical VMEM.
    return int(min(max(resident_bytes + (8 << 20), 32 << 20), 48 << 20))


def _rowwise_call(kernel, x2d, extra_inputs=(), extra_specs=(),
                  budget_bytes=28 << 20, max_rows=2048, work_f32_rows=2.0):
    N, C = x2d.shape
    isz = x2d.dtype.itemsize
    sub = _sublane(x2d.dtype)
    # double-buffered in+out DMA tiles + in-kernel f32-equivalent working set
    per_row = 2 * 2 * C * isz + int(work_f32_rows * C * 4)
    fixed = 2 * sum(int(a.size) * a.dtype.itemsize for a in extra_inputs)
    rb = _choose_block_rows(N, per_row, fixed_bytes=fixed,
                            budget_bytes=budget_bytes, max_rows=max_rows,
                            sub=sub)
    grid0 = pl.cdiv(N, rb)
    resident = rb * per_row + fixed

    return pl.pallas_call(
        kernel,
        out_shape=jax.ShapeDtypeStruct((N, C), x2d.dtype),
        grid=(grid0,),
        in_specs=[pl.BlockSpec((rb, C), lambda i: (i, 0))] + list(extra_specs),
        out_specs=pl.BlockSpec((rb, C), lambda i: (i, 0)),
        compiler_params=pltpu.CompilerParams(
            dimension_semantics=("parallel",),
            vmem_limit_bytes=_vmem_limit(resident)),
    )(x2d, *extra_inputs)


def _matrix_call(x2d, w_t, bias, eps, use_bf16=True):
    N, C = x2d.shape
    isz = x2d.dtype.itemsize
    wdt = jnp.bfloat16 if use_bf16 else jnp.float32
    wt = w_t.astype(wdt)
    wisz = jnp.dtype(wdt).itemsize

    # Column-tile the pre-transposed weight only when its double-buffered tile
    # would not fit its own budget; never let it eat the row-tile budget.
    W_BUDGET = 8 << 20
    if 2 * C * C * wisz <= W_BUDGET:
        tn = C
    else:
        tn = C
        for cand in (512, 256, 128):
            if C % cand == 0 and 2 * C * cand * wisz <= W_BUDGET:
                tn = cand
                break
    n_col = C // tn if C % tn == 0 else 1
    if n_col == 1:
        tn = C

    # per-row bytes: dbl-buffered x tile + dbl-buffered out column tile +
    # xn scratch (matmul dtype) + f32 upcast working set.
    per_row = 2 * C * isz + 2 * tn * isz + C * wisz + C * 4
    fixed = 2 * (C * tn * wisz + tn * 4)
    rb = _choose_block_rows(N, per_row, fixed_bytes=fixed,
                            budget_bytes=24 << 20, max_rows=1024,
                            sub=_sublane(x2d.dtype))
    grid0 = pl.cdiv(N, rb)
    resident = rb * per_row + fixed

    return pl.pallas_call(
        functools.partial(_matrix_kernel, eps=eps),
        out_shape=jax.ShapeDtypeStruct((N, C), x2d.dtype),
        grid=(grid0, n_col),
        in_specs=[pl.BlockSpec((rb, C), lambda i, j: (i, 0)),
                  pl.BlockSpec((C, tn), lambda i, j: (0, j)),
                  pl.BlockSpec((1, tn), lambda i, j: (0, j))],
        out_specs=pl.BlockSpec((rb, tn), lambda i, j: (i, j)),
        scratch_shapes=[pltpu.VMEM((rb, C), wdt)],   # cached xn, reused over j
        compiler_params=pltpu.CompilerParams(
            dimension_semantics=("parallel", "arbitrary"),
            vmem_limit_bytes=_vmem_limit(resident)),
    )(x2d, wt, bias.reshape(1, C).astype(jnp.float32))


# ----------------------------------------------------------------------------
# Module-equivalent wrapper
# ----------------------------------------------------------------------------
class Args:
    def __init__(self, lnv, sigma=0.25, adanorm_scale=1.0, nowb_scale=1.0,
                 mean_detach=False, std_detach=False):
        self.lnv = lnv
        self.sigma = sigma
        self.adanorm_scale = adanorm_scale
        self.nowb_scale = nowb_scale
        self.mean_detach = mean_detach
        self.std_detach = std_detach


class LayerNormImplPallas:
    def __init__(self, args, hidden, eps=1e-5, elementwise_affine=True,
                 key=jax.random.PRNGKey(0)):
        self.mode = args.lnv
        self.sigma = args.sigma
        self.hidden = hidden
        self.adanorm_scale = args.adanorm_scale
        self.nowb_scale = args.nowb_scale
        self.eps = eps
        if self.mode == 'no_norm':
            elementwise_affine = False
        self.elementwise_affine = elementwise_affine
        if self.elementwise_affine:
            # reset_parameters(): ones / zeros
            self.weight = jnp.ones((hidden,), jnp.float32)
            self.bias = jnp.zeros((hidden,), jnp.float32)
        else:
            self.weight = None
            self.bias = None
        if self.mode in ['matrix_rand', 'matrix_eye']:
            kw, kb = jax.random.split(key)
            bound = 1.0 / math.sqrt(hidden)
            if self.mode == 'matrix_eye':
                self.matrix_w = jnp.eye(hidden, dtype=jnp.float32)
            else:
                self.matrix_w = jax.random.uniform(
                    kw, (hidden, hidden), jnp.float32, -bound, bound)
            self.matrix_b = jax.random.uniform(
                kb, (hidden,), jnp.float32, -bound, bound)
            # Pre-transpose once: the kernel does xn @ W.T without an
            # in-kernel XLU transpose / VMEM copy per grid step.
            self.matrix_w_t = jnp.asarray(self.matrix_w.T)

    def __call__(self, x):
        if self.mode == 'no_norm':
            return x

        shape = x.shape
        C = shape[-1]
        assert C == self.hidden
        x2d = x.reshape(-1, C)
        full_spec = pl.BlockSpec((1, C), lambda i: (0, 0))

        if self.mode == 'topk':
            k = max(int(self.hidden * self.sigma), 1)
            w = self.weight if self.weight is not None else jnp.ones((C,), jnp.float32)
            b = self.bias if self.bias is not None else jnp.zeros((C,), jnp.float32)
            kern = functools.partial(_topk_layernorm_kernel, eps=self.eps, k=k)
            out = _rowwise_call(
                kern, x2d,
                extra_inputs=(w.reshape(1, C), b.reshape(1, C)),
                extra_specs=(full_spec, full_spec),
                max_rows=512, work_f32_rows=5.0)   # f32 upcast + 2 int32 keys + masks
        elif self.mode == 'adanorm':
            kern = functools.partial(_adanorm_kernel, eps=self.eps,
                                     scale=self.adanorm_scale)
            out = _rowwise_call(kern, x2d)
        elif self.mode == 'nowb':
            kern = functools.partial(_nowb_kernel, eps=self.eps,
                                     scale=self.nowb_scale)
            out = _rowwise_call(kern, x2d)
        elif self.mode == 'matrix_eye':
            # Identity weight -> skip the matmul and the C*C weight traffic.
            kern = functools.partial(_matrix_eye_kernel, eps=self.eps)
            out = _rowwise_call(kern, x2d,
                                extra_inputs=(self.matrix_b.reshape(1, C),),
                                extra_specs=(full_spec,))
        elif self.mode == 'matrix_rand':
            out = _matrix_call(x2d, self.matrix_w_t, self.matrix_b, self.eps,
                               use_bf16=True)
        else:
            # TODO(synk): 'layernorm' mode falls through the reference forward
            # and implicitly returns None; mirrored here rather than faked.
            return None

        return out.reshape(shape)


# ----------------------------------------------------------------------------
# Pure-JAX references (demo sanity checks)
# ----------------------------------------------------------------------------
def _ref_nowb(x, eps, scale):
    mean = x.mean(-1, keepdims=True)
    std = x.std(-1, ddof=1, keepdims=True)
    return (x - mean) / (std + eps) * scale


def _ref_adanorm(x, eps, scale):
    mean = x.mean(-1, keepdims=True)
    std = x.std(-1, ddof=1, keepdims=True)
    xc = x - mean
    m2 = xc.mean(-1, keepdims=True)
    gra = 0.1 * (xc - m2) / (std + eps)
    return (xc - xc * gra) / (std + eps) * scale


def _ref_topk(x, eps, k, w, b):
    shp = x.shape
    C = shp[-1]
    x2 = x.reshape(-1, C)
    srt = jnp.sort(x2, axis=-1)
    kmax = srt[:, C - k][:, None]
    kmin = srt[:, k - 1][:, None]
    xc = jnp.clip(x2, kmin, kmax)
    mean = xc.mean(-1, keepdims=True)
    var = ((xc - mean) ** 2).mean(-1, keepdims=True)
    y = (xc - mean) / jnp.sqrt(var + eps) * w + b
    return y.reshape(shp)


def _ref_matrix(x, eps, w, b):
    mean = x.mean(-1, keepdims=True)
    std = x.std(-1, ddof=1, keepdims=True)
    xn = (x - mean) / (std + eps)
    return xn @ w.T + b


# ----------------------------------------------------------------------------
# Demo
# ----------------------------------------------------------------------------
if __name__ == "__main__":
    key = jax.random.PRNGKey(0)
    TOL = dict(rtol=1e-2, atol=1e-2)

    T, B, C = 8, 2, 32
    x = jax.random.normal(key, (T, B, C), jnp.float32)

    # no_norm: identity; 'layernorm' mirrors the reference fall-through (None)
    assert LayerNormImplPallas(Args('no_norm'), hidden=C)(x) is x
    assert LayerNormImplPallas(Args('layernorm'), hidden=C)(x) is None

    # topk (small C -> XLU-sum count path)
    mod = LayerNormImplPallas(Args('topk', sigma=0.25), hidden=C)
    y = jax.block_until_ready(mod(x))
    k = max(int(C * 0.25), 1)
    assert y.shape == x.shape and y.dtype == x.dtype
    assert jnp.allclose(y, _ref_topk(x, 1e-5, k, mod.weight, mod.bias), **TOL)

    # topk (C=128 -> MXU count path)
    C2 = 128
    x2 = jax.random.normal(jax.random.PRNGKey(1), (4, 2, C2), jnp.float32)
    mod = LayerNormImplPallas(Args('topk', sigma=0.25), hidden=C2)
    y2 = jax.block_until_ready(mod(x2))
    k2 = max(int(C2 * 0.25), 1)
    assert y2.shape == x2.shape and y2.dtype == x2.dtype
    assert jnp.allclose(y2, _ref_topk(x2, 1e-5, k2, mod.weight, mod.bias), **TOL)

    # adanorm
    mod = LayerNormImplPallas(Args('adanorm', adanorm_scale=1.5), hidden=C)
    y = jax.block_until_ready(mod(x))
    assert y.shape == x.shape and y.dtype == x.dtype
    assert jnp.allclose(y, _ref_adanorm(x, 1e-5, 1.5), **TOL)

    # nowb (ragged row count -> exercises the masked partial last block)
    xr = jax.random.normal(jax.random.PRNGKey(2), (5, 3, C), jnp.float32)
    mod = LayerNormImplPallas(Args('nowb', nowb_scale=2.0), hidden=C)
    y = jax.block_until_ready(mod(xr))
    assert y.shape == xr.shape and y.dtype == xr.dtype
    assert jnp.allclose(y, _ref_nowb(xr, 1e-5, 2.0), **TOL)

    # matrix_eye (rowwise shortcut) / matrix_rand (bf16 MXU + xn scratch)
    for mode in ('matrix_eye', 'matrix_rand'):
        mod = LayerNormImplPallas(Args(mode), hidden=C)
        y = jax.block_until_ready(mod(x))
        assert y.shape == x.shape and y.dtype == x.dtype
        assert jnp.allclose(y, _ref_matrix(x, 1e-5, mod.matrix_w, mod.matrix_b), **TOL)

    print("KERNEL_OK")
</pallas_src>

<mosaic_0001>
module attributes {stable_mosaic.version = 11 : i64} {
  func.func @_topk_layernorm_kernel(%arg0: i32, %arg1: memref<8x32xf32, #tpu.memory_space<vmem>>, %arg2: memref<1x32xf32, #tpu.memory_space<vmem>>, %arg3: memref<1x32xf32, #tpu.memory_space<vmem>>, %arg4: memref<8x32xf32, #tpu.memory_space<vmem>>) attributes {dimension_semantics = [#tpu.dimension_semantics<parallel>], iteration_bounds = array<i64: 2>, scalar_prefetch = 0 : i64, scratch_operands = 0 : i64, tpu.core_type = #tpu.core_type<tc>, window_params = [{transform_indices = @transform_0, window_bounds = array<i64: 8, 32>}, {pipeline_mode = #tpu.pipeline_mode<synchronous>, transform_indices = @transform_1, window_bounds = array<i64: 1, 32>}, {pipeline_mode = #tpu.pipeline_mode<synchronous>, transform_indices = @transform_2, window_bounds = array<i64: 1, 32>}, {transform_indices = @transform_3, window_bounds = array<i64: 8, 32>}]} {
    %c0 = arith.constant 0 : index
    %c0_0 = arith.constant 0 : index
    %0 = vector.load %arg1[%c0, %c0_0] : memref<8x32xf32, #tpu.memory_space<vmem>>, vector<8x32xf32>
    %1 = tpu.bitcast %0 : vector<8x32xf32> -> vector<8x32xi32>
    %c31_i32 = arith.constant 31 : i32
    %2 = vector.broadcast %c31_i32 : i32 to vector<8x32xi32>
    %3 = arith.shrsi %1, %2 : vector<8x32xi32>
    %c2147483647_i32 = arith.constant 2147483647 : i32
    %4 = vector.broadcast %c2147483647_i32 : i32 to vector<8x32xi32>
    %5 = arith.andi %3, %4 : vector<8x32xi32>
    %6 = arith.xori %1, %5 : vector<8x32xi32>
    %cst = arith.constant 0.000000e+00 : f32
    %7 = vector.broadcast %cst : f32 to vector<8x32xf32>
    %8 = arith.subf %7, %0 : vector<8x32xf32>
    %9 = tpu.bitcast %8 : vector<8x32xf32> -> vector<8x32xi32>
    %c31_i32_1 = arith.constant 31 : i32
    %10 = vector.broadcast %c31_i32_1 : i32 to vector<8x32xi32>
    %11 = arith.shrsi %9, %10 : vector<8x32xi32>
    %c2147483647_i32_2 = arith.constant 2147483647 : i32
    %12 = vector.broadcast %c2147483647_i32_2 : i32 to vector<8x32xi32>
    %13 = arith.andi %11, %12 : vector<8x32xi32>
    %14 = arith.xori %9, %13 : vector<8x32xi32>
    %c0_i32 = arith.constant 0 : i32
    %15 = vector.broadcast %c0_i32 : i32 to vector<8x1xi32>
    %c-2147483648_i32 = arith.constant -2147483648 : i32
    %cst_3 = arith.constant 8.000000e+00 : f32
    %c0_i32_4 = arith.constant 0 : i32
    %c32_i32 = arith.constant 32 : i32
    %16 = arith.addi %c0_i32_4, %c32_i32 : i32
    %c1_i32 = arith.constant 1 : i32
    %17:2 = scf.for %arg5 = %c0_i32_4 to %16 step %c1_i32 iter_args(%arg6 = %15, %arg7 = %15) -> (vector<8x1xi32>, vector<8x1xi32>)  : i32 {
      %c31_i32_25 = arith.constant 31 : i32
      %67 = arith.subi %c31_i32_25, %arg5 : i32
      %c1_i32_26 = arith.constant 1 : i32
      %68 = arith.shli %c1_i32_26, %67 : i32
      %69 = vector.broadcast %68 : i32 to vector<8x1xi32>
      %70 = arith.ori %arg6, %69 : vector<8x1xi32>
      %71 = vector.broadcast %68 : i32 to vector<8x1xi32>
      %72 = arith.ori %arg7, %71 : vector<8x1xi32>
      %73 = vector.broadcast %c-2147483648_i32 : i32 to vector<8x1xi32>
      %74 = arith.xori %70, %73 : vector<8x1xi32>
      %75 = vector.broadcast %74 : vector<8x1xi32> to vector<8x32xi32>
      %76 = arith.cmpi sge, %6, %75 : vector<8x32xi32>
      %77 = arith.extui %76 : vector<8x32xi1> to vector<8x32xi32>
      %78 = arith.sitofp %77 : vector<8x32xi32> to vector<8x32xf32>
      %cst_27 = arith.constant dense<0.000000e+00> : vector<8xf32>
      %79 = vector.multi_reduction <add>, %78, %cst_27 [1] : vector<8x32xf32> to vector<8xf32>
      %80 = vector.shape_cast %79 : vector<8xf32> to vector<8x1xf32>
      %81 = vector.broadcast %c-2147483648_i32 : i32 to vector<8x1xi32>
      %82 = arith.xori %72, %81 : vector<8x1xi32>
      %83 = vector.broadcast %82 : vector<8x1xi32> to vector<8x32xi32>
      %84 = arith.cmpi sge, %14, %83 : vector<8x32xi32>
      %85 = arith.extui %84 : vector<8x32xi1> to vector<8x32xi32>
      %86 = arith.sitofp %85 : vector<8x32xi32> to vector<8x32xf32>
      %cst_28 = arith.constant dense<0.000000e+00> : vector<8xf32>
      %87 = vector.multi_reduction <add>, %86, %cst_28 [1] : vector<8x32xf32> to vector<8xf32>
      %88 = vector.shape_cast %87 : vector<8xf32> to vector<8x1xf32>
      %89 = vector.broadcast %cst_3 : f32 to vector<8x1xf32>
      %90 = arith.cmpf oge, %80, %89 : vector<8x1xf32>
      %91 = arith.select %90, %70, %arg6 : vector<8x1xi1>, vector<8x1xi32>
      %92 = vector.broadcast %cst_3 : f32 to vector<8x1xf32>
      %93 = arith.cmpf oge, %88, %92 : vector<8x1xf32>
      %94 = arith.select %93, %72, %arg7 : vector<8x1xi1>, vector<8x1xi32>
      scf.yield %91, %94 : vector<8x1xi32>, vector<8x1xi32>
    }
    %c32_i32_5 = arith.constant 32 : i32
    %c-2147483648_i32_6 = arith.constant -2147483648 : i32
    %18 = vector.broadcast %c-2147483648_i32_6 : i32 to vector<8x1xi32>
    %19 = arith.xori %17#0, %18 : vector<8x1xi32>
    %c31_i32_7 = arith.constant 31 : i32
    %20 = vector.broadcast %c31_i32_7 : i32 to vector<8x1xi32>
    %21 = arith.shrsi %19, %20 : vector<8x1xi32>
    %c2147483647_i32_8 = arith.constant 2147483647 : i32
    %22 = vector.broadcast %c2147483647_i32_8 : i32 to vector<8x1xi32>
    %23 = arith.andi %21, %22 : vector<8x1xi32>
    %24 = arith.xori %19, %23 : vector<8x1xi32>
    %25 = tpu.bitcast %24 : vector<8x1xi32> -> vector<8x1xf32>
    %c-2147483648_i32_9 = arith.constant -2147483648 : i32
    %26 = vector.broadcast %c-2147483648_i32_9 : i32 to vector<8x1xi32>
    %27 = arith.xori %17#1, %26 : vector<8x1xi32>
    %c31_i32_10 = arith.constant 31 : i32
    %28 = vector.broadcast %c31_i32_10 : i32 to vector<8x1xi32>
    %29 = arith.shrsi %27, %28 : vector<8x1xi32>
    %c2147483647_i32_11 = arith.constant 2147483647 : i32
    %30 = vector.broadcast %c2147483647_i32_11 : i32 to vector<8x1xi32>
    %31 = arith.andi %29, %30 : vector<8x1xi32>
    %32 = arith.xori %27, %31 : vector<8x1xi32>
    %33 = tpu.bitcast %32 : vector<8x1xi32> -> vector<8x1xf32>
    %cst_12 = arith.constant 0.000000e+00 : f32
    %34 = vector.broadcast %cst_12 : f32 to vector<8x1xf32>
    %35 = arith.subf %34, %33 : vector<8x1xf32>
    %36 = vector.broadcast %35 : vector<8x1xf32> to vector<8x32xf32>
    %37 = arith.maximumf %36, %0 : vector<8x32xf32>
    %38 = vector.broadcast %25 : vector<8x1xf32> to vector<8x32xf32>
    %39 = arith.minimumf %38, %37 : vector<8x32xf32>
    %cst_13 = arith.constant dense<0.000000e+00> : vector<8xf32>
    %40 = vector.multi_reduction <add>, %39, %cst_13 [1] : vector<8x32xf32> to vector<8xf32>
    %41 = vector.shape_cast %40 : vector<8xf32> to vector<8x1xf32>
    %42 = arith.mulf %39, %39 : vector<8x32xf32>
    %cst_14 = arith.constant dense<0.000000e+00> : vector<8xf32>
    %43 = vector.multi_reduction <add>, %42, %cst_14 [1] : vector<8x32xf32> to vector<8xf32>
    %44 = vector.shape_cast %43 : vector<8xf32> to vector<8x1xf32>
    %cst_15 = arith.constant 3.125000e-02 : f32
    %45 = vector.broadcast %cst_15 : f32 to vector<8x1xf32>
    %46 = arith.mulf %41, %45 : vector<8x1xf32>
    %cst_16 = arith.constant 3.125000e-02 : f32
    %47 = vector.broadcast %cst_16 : f32 to vector<8x1xf32>
    %48 = arith.mulf %44, %47 : vector<8x1xf32>
    %49 = arith.mulf %46, %46 : vector<8x1xf32>
    %50 = arith.subf %48, %49 : vector<8x1xf32>
    %cst_17 = arith.constant 0.000000e+00 : f32
    %51 = vector.broadcast %cst_17 : f32 to vector<8x1xf32>
    %52 = arith.maximumf %50, %51 : vector<8x1xf32>
    %cst_18 = arith.constant 9.99999974E-6 : f32
    %53 = vector.broadcast %cst_18 : f32 to vector<8x1xf32>
    %54 = arith.addf %52, %53 : vector<8x1xf32>
    %55 = math.rsqrt %54 : vector<8x1xf32>
    %56 = vector.broadcast %46 : vector<8x1xf32> to vector<8x32xf32>
    %57 = arith.subf %39, %56 : vector<8x32xf32>
    %58 = vector.broadcast %55 : vector<8x1xf32> to vector<8x32xf32>
    %59 = arith.mulf %57, %58 : vector<8x32xf32>
    %c0_19 = arith.constant 0 : index
    %c0_20 = arith.constant 0 : index
    %60 = vector.load %arg2[%c0_19, %c0_20] : memref<1x32xf32, #tpu.memory_space<vmem>>, vector<1x32xf32>
    %61 = vector.broadcast %60 : vector<1x32xf32> to vector<8x32xf32>
    %62 = arith.mulf %59, %61 : vector<8x32xf32>
    %c0_21 = arith.constant 0 : index
    %c0_22 = arith.constant 0 : index
    %63 = vector.load %arg3[%c0_21, %c0_22] : memref<1x32xf32, #tpu.memory_space<vmem>>, vector<1x32xf32>
    %64 = vector.broadcast %63 : vector<1x32xf32> to vector<8x32xf32>
    %65 = arith.addf %62, %64 : vector<8x32xf32>
    %c0_23 = arith.constant 0 : index
    %c0_24 = arith.constant 0 : index
    %66 = vector.load %arg4[%c0_23, %c0_24] : memref<8x32xf32, #tpu.memory_space<vmem>>, vector<8x32xf32>
    tpu.vector_store %arg4[%c0_23, %c0_24], %65 {strides = array<i32>} : memref<8x32xf32, #tpu.memory_space<vmem>>, vector<8x32xf32>,
    return
  }
  func.func @transform_0(%arg0: i32) -> (i32, i32) {
    %c0_i32 = arith.constant 0 : i32
    %c0_i32_0 = arith.constant 0 : i32
    return %arg0, %c0_i32 : i32, i32
  }
  func.func @transform_1(%arg0: i32) -> (i32, i32) {
    %c0_i32 = arith.constant 0 : i32
    %c0_i32_0 = arith.constant 0 : i32
    %c0_i32_1 = arith.constant 0 : i32
    return %c0_i32, %c0_i32_0 : i32, i32
  }
  func.func @transform_2(%arg0: i32) -> (i32, i32) {
    %c0_i32 = arith.constant 0 : i32
    %c0_i32_0 = arith.constant 0 : i32
    %c0_i32_1 = arith.constant 0 : i32
    return %c0_i32, %c0_i32_0 : i32, i32
  }
  func.func @transform_3(%arg0: i32) -> (i32, i32) {
    %c0_i32 = arith.constant 0 : i32
    %c0_i32_0 = arith.constant 0 : i32
    return %arg0, %c0_i32 : i32, i32
  }
}

</mosaic_0001>

<bundles_post_ra>
// kernel: tpu_custom_call.1
= control target key start
LH: loop header
LB: loop body
LE: loop exit
PB: predicated region body
PF: predicated region fallthrough
CT: control target
= control target key end

     0   :  { %8 = vsyncpa [#allocation3], 0  ;;  %s791_s0 = inlined_call_operand.hbm [shape: f32[16,32], index: 0, kind: input, shape index: {}]   ;;  %s792_s1 = inlined_call_operand.vmem [shape: f32[1,32], index: 1, kind: input, shape index: {}]   ;;  %s793_s2 = inlined_call_operand.vmem [shape: f32[1,32], index: 2, kind: input, shape index: {}]   ;;  %s794_s3 = inlined_call_operand.hbm [shape: f32[16,32], index: 3, kind: output, shape index: {}]  }
   0x1   :  { %10 = vsyncpa [#allocation3 + $0x1], 0 }
   0x2   :  { %11 = vsyncpa [#allocation4], 0 }
   0x3   :  { %13 = vsyncpa [#allocation4 + $0x1], 0  ;;  %s606_s12 = smov 0   ;;  %s608_s13 = smov 0  }
   0x4   :  { %s610_s14 = smov 0   ;;  %s612_s15 = smov 0  }
   0x5 LB: > { %s627_s16 = sadd.s32 4294967295, %s568_s15   ;;  %s370_s17 = sadd.s32 4294967294, %s568_s15   ;;  %s568_s15 = sphi %s612_s15, %s809_s15   ;;  %s564_s14 = sphi %s610_s14, %s808_s14   ;;  %s560_s13 = sphi %s608_s13, %s807_s13   ;;  %s556_s12 = sphi %s606_s12, %s806_s12  }
   0x6   : > { %s631_s18 = sadd.s32 1, %s568_s15   ;;  %s26_s19 = sadd.s32 1, %s564_s14 }
   0x7   : > { %s23_s20 = ssub.s32 %s568_s15, %s631_s18  ;;  %p33_p0 = scmp.ne.s32.totalorder %s564_s14, %s560_s13 }
   0x8   : > { %p24_p1 = scmp.eq.s32.totalorder %s23_s20, 0  ;;  %p34_p2 = scmp.eq.s32.totalorder %s568_s15, 0 }
   0x9   : > { %p39_p3 = scmp.ne.s32.totalorder %s560_s13, %s556_s12  ;;  %p40_p4 = scmp.eq.s32.totalorder %s627_s16, 0 }
   0xa   : > { %s643_s21 = scalar_select %p24_p1, %s564_s14, %s26_s19  }
   0xb   : > { %p645_p5 = por %p34_p2, %p33_p0  ;;  %p649_p6 = por %p40_p4, %p39_p3 }
   0xc   : > { %p105_p7 = scmp.eq.s32.totalorder %s627_s16, 1  ;;  %p111_p8 = scmp.eq.s32.totalorder %s370_s17, 1 }
   0xd   : > { %p398_p10 = scmp.lt.s32.totalorder %s568_s15, 2  ;;  %s137_s26 = sand.u32 1, %s564_s14  }
   0xe   : > { %p656_p11 = por %p105_p7, %p33_p0  ;;  %p660_p12 = por %p111_p8, %p39_p3 }
   0xf   : > { %s374_s27 = sshll.u32 %s568_s15, 7  ;;  %s373_s28 = sshll.u32 %s137_s26, 3 }
  0x10   : > { %s798_s24 = scalar_select %p656_p11, 1, 0 }
  0x11   : > { %s799_s25 = scalar_select %p660_p12, 1, 0 }
  0x12   : > { %s669_s4 = scalar_lea.hbm %s791_s0, %s374_s27  ;;  %s141_s5 = scalar_lea.vmem [#allocation2], %s373_s28 }
  0x13   : > { %s148_s6 = sshll.u32 %s141_s5, 4  ;;  %p673_p13 = pnand %p398_p10, %p645_p5  ;;  %s677_s6 = int_to_ptr.vmem [resolvable:$true] %s148_s6 }
  0x14   : > { %s138_s8 = scalar_lea.sflag [#allocation3], %s137_s26  ;;  %s460_s9 = scalar_lea.hbm %s669_s4, 128 }
  0x15   : > { %p461_p2 = scmp.ne.s32.totalorder %s669_s4, %s460_s9  ;;  %p462_p3 = pneg %p673_p13 }
  0x16   : > { %s465_s17 = scalar_lea.hbm %s791_s0, 256  ;;  %p466_p5 = scmp.lt.u32.totalorder %s669_s4, %s791_s0 }
  0x17   : > { %p463_p4 = pnand %p462_p3, %p461_p2  ;;  %p467_p8 = scmp.lt.u32.totalorder %s465_s17, %s460_s9 }
  0x18   : > { %p469_p9 = scmp.lt.u32.totalorder %s460_s9, %s669_s4 }
  0x19   : > { %p464_p7 = pneg %p463_p4  ;;  %p468_p10 = por %p467_p8, %p466_p5 }
  0x1b   : > { %p470_p0 = por %p469_p9, %p468_p10 }
  0x1d   : > { %p471_p1 = pnand %p470_p0, %p464_p7 }
  0x1f   : > { %474 = shalt.err (!%p471_p1)
}
  0x20   : > { %s475_s22 = scalar_lea.vmem %s677_s6, 128  ;;  %s582_s26 = smov [#allocation2]  }
  0x21   : > { %p476_p2 = scmp.ne.s32.totalorder %s677_s6, %s475_s22  ;;  %s480_s27 = sshll.u32 %s582_s26, 4  ;;  %s481_s27 = int_to_ptr.vmem [resolvable:$false] %s480_s27 }
  0x22   : > { %s482_s28 = scalar_lea.vmem %s481_s27, 256  ;;  %p483_p11 = scmp.lt.s32.totalorder %s677_s6, %s481_s27 }
  0x23   : > { %p478_p4 = pnand %p476_p2, %p462_p3  ;;  %p484_p5 = scmp.lt.s32.totalorder %s482_s28, %s475_s22 }
  0x25   : > { %p479_p12 = pneg %p478_p4  ;;  %p485_p8 = por %p484_p5, %p483_p11 }
  0x27   : > { %p486_p9 = pnand %p485_p8, %p479_p12 }
  0x29   : > { %489 = shalt.err (!%p486_p9)
}
  0x2a   : > { %393 = dma.hbm_to_vmem [thread:$0]  (!%p673_p13), %s669_s4, 128, %s677_s6, %s138_s8  }
  0x2b   : > { %p801_p0 = scmp.lt.s32.totalorder %s568_s15, 3  ;;  %p802_p1 = scmp.ge.s32.totalorder %s568_s15, 1 }
  0x2d   : > { %p154_p3 = pnand %p802_p1, %p801_p0 }
  0x2e   : > { %s711_s29 = sand.u32 (!%p154_p3), 1, %s560_s13  }
  0x2f   : > { %157 = sbr.rel (%p154_p3) target bundleno = 421 (0x1a5), region = 32  ;;  %s376_s30 = sshll.u32 (!%p154_p3), %s711_s29, 3 }
  0x30   : > { %s160_s5 = scalar_lea.sflag (!%p154_p3), [#allocation3], %s711_s29  ;;  %s163_s9 = scalar_lea.vmem (!%p154_p3), [#allocation2], %s376_s30 }
  0x36   : > { %547 = dma.done.wait (%p649_p6), %s160_s5, 128  }
  0x37   : > { %549 = vsyncadd (%p649_p6), %s160_s5, 4294967168  ;;  %v186_v0 = vld [vmem:[%s163_s9] sm:$0xff]  ;;  %s719_s4 = scalar_lea.vmem [#allocation5], %s376_s30  ;;  %v570_v8 = vmov 0   ;;  %v574_v9 = vmov 0   ;;  %s721_s6 = smov 0  }
  0x38   : > { %v188_v1 = vshra.s32 %v186_v0, 31  ;;  %v191_v2 = vsub.f32 0.0, %v186_v0 }
  0x3a   : > { %v189_v3 = vand.u32 2147483647, %v188_v1  ;;  %v193_v4 = vshra.s32 %v191_v2, 31 }
  0x3c   : > { %v190_v5 = vxor.u32 %v189_v3, %v186_v0  ;;  %v194_v6 = vand.u32 2147483647, %v193_v4 }
  0x3e   : > { %v195_v7 = vxor.u32 %v194_v6, %v191_v2 }
  0x3f LB: >> { %s204_s23 = ssub.s32 31, %s580_s6  ;;  %s583_s7 = smov 1   ;;  %vm213_vm0 = vcmask 261120   ;;  %v584_v15 = vmov 0.0   ;;  %s580_s6 = sphi %s721_s6, %s201_s6   ;;  %v576_v9 = vphi %v574_v9, %v575_v9   ;;  %v572_v8 = vphi %v570_v8, %v571_v8  }
  0x40   : >> { %s205_s8 = sshll.u32 %s583_s7, %s204_s23  ;;  %s201_s6 = sadd.s32 1, %s580_s6  }
  0x41   : >> { %v206_v10 = vstv %s205_s8  ;;  %p198_p6 = scmp.ge.s32.totalorder %s201_s6, 32  }
  0x42   : >> { %v207_v11 = vor.u32 %v576_v9, %v206_v10  ;;  %v208_v12 = vor.u32 %v572_v8, %v206_v10  ;;  %v380_v48 = vld [vmem:[%s792_s1] ss:$0 sm:$0xff] (%p198_p6)  ;;  %s383_s20 = sshll.u32 (%p198_p6), %s627_s16, 7  ;;  %s289_s22 = sshll.u32 (%p198_p6), %s719_s4, 4  ;;  %s747_s22 = int_to_ptr.vmem [resolvable:$true] %s289_s22 }
  0x43   : > { %v381_v50 = vld [vmem:[%s793_s2] ss:$0 sm:$0xff] (%p198_p6)  ;;  %s745_s28 = scalar_lea.hbm (%p198_p6), %s794_s3, %s383_s20  ;;  %s276_s30 = scalar_lea.sflag (%p198_p6), [#allocation4], %s711_s29 }
  0x44   : >> { %v209_v13 = vxor.u32 2147483648, %v207_v11  ;;  %v217_v14 = vxor.u32 2147483648, %v208_v12  ;;  %s490_s5 = scalar_lea.vmem (%p198_p6), %s747_s22, 128  ;;  %p803_p12 = scmp.ne.s32.totalorder (%p198_p6), %s798_s24, 0 }
  0x45   : > { %p491_p11 = scmp.ne.s32.totalorder (%p198_p6), %s747_s22, %s490_s5  ;;  %s585_s16 = smov (%p198_p6), [#allocation5]  }
  0x46   : >> { %vm210_vm1 = vcmp.ge.s32.totalorder %v190_v5, %v209_v13  ;;  %vm218_vm2 = vcmp.ge.s32.totalorder %v195_v7, %v217_v14  ;;  %s494_s9 = sshll.u32 (%p198_p6), %s585_s16, 4  ;;  %s495_s9 = int_to_ptr.vmem [resolvable:$false] %s494_s9 }
  0x47   : >> { %v378_v16 = vsel %vm210_vm1, 1.0, %v584_v15  ;;  %v379_v17 = vsel %vm218_vm2, 1.0, %v584_v15  ;;  %p492_p13 = pnand (%p198_p6), %p491_p11, %p803_p12  ;;  %s496_s6 = scalar_lea.vmem (%p198_p6), %s495_s9, 256 }
  0x48   : >> { %v214_v18 = vsel %vm213_vm0, %v378_v16, 0.0  ;;  %v221_v19 = vsel %vm213_vm0, %v379_v17, 0.0  ;;  %p497_p10 = scmp.lt.s32.totalorder (%p198_p6), %s747_s22, %s495_s9  ;;  %p498_p2 = scmp.lt.s32.totalorder (%p198_p6), %s496_s6, %s490_s5 }
  0x49   : >> { %215 = vadd.xlane.f32.xlu0 %v214_v18  ;;  %p493_p7 = pneg (%p198_p6), %p492_p13 }
  0x4a   : > { %p499_p4 = por (%p198_p6), %p498_p2, %p497_p10 }
  0x4c   : > { %p500_p5 = pnand (%p198_p6), %p499_p4, %p493_p7 }
  0x4d   : >> { %222 = vadd.xlane.f32.xlu0 %v221_v19 }
  0xd6   : >> { %v216_v20 = vpop.xlane.xlu0 %215 }
  0xd7   : >> { %vm224_vm3 = vcmp.ge.f32.partialorder %v216_v20, 8.0  ;;  %200 = sbr.rel (!%p198_p6) target bundleno = 63 (0x3f), region = 84 }
  0xd8   : >> { %v225_v21 = vsel %vm224_vm3, %v207_v11, %v576_v9  }
  0xd9   : >> { %v575_v9 = vmov %v225_v21   ;;  %v228_v24 = vxor.u32 (%p198_p6), 2147483648, %v225_v21 }
  0xda   : >> { %v223_v22 = vpop.xlane.xlu0 %222 }
  0xdb   : >> { %vm226_vm4 = vcmp.ge.f32.partialorder %v223_v22, 8.0  ;;  %v229_v26 = vshra.s32 (%p198_p6), %v228_v24, 31 }
  0xdc   : >> { %v227_v23 = vsel %vm226_vm4, %v208_v12, %v572_v8  }
  0xdd   : >> { %v571_v8 = vmov %v227_v23   ;;  %v233_v25 = vxor.u32 (%p198_p6), 2147483648, %v227_v23  ;;  %v230_v28 = vand.u32 (%p198_p6), 2147483647, %v229_v26 }
  0xdf   : > { %v234_v27 = vshra.s32 %v233_v25, 31  ;;  %v231_v31 = vxor.u32 %v230_v28, %v228_v24 }
  0xe1   : > { %v235_v29 = vand.u32 2147483647, %v234_v27 }
  0xe3   : > { %v236_v30 = vxor.u32 %v235_v29, %v233_v25 }
  0xe5   : > { %v238_v32 = vsub.f32 0.0, %v236_v30 }
  0xe7   : > { %v239_v33 = vmax.f32 %v238_v32, %v186_v0 }
  0xe9   : > { %v240_v34 = vmin.f32 %v231_v31, %v239_v33 }
  0xeb   : > { %v242_v35 = vsel %vm213_vm0, %v240_v34, 0.0  ;;  %v245_v36 = vmul.f32 %v240_v34, %v240_v34 }
  0xec   : > { %243 = vadd.xlane.f32.xlu0 %v242_v35 }
  0xed   : > { %v246_v37 = vsel %vm213_vm0, %v245_v36, 0.0 }
  0xf0   : > { %247 = vadd.xlane.f32.xlu0 %v246_v37 }
 0x179   : > { %v244_v38 = vpop.xlane.xlu0 %243 }
 0x17a   : > { %v249_v39 = vmul.f32 0.03125, %v244_v38 }
 0x17c   : > { %v251_v41 = vmul.f32 %v249_v39, %v249_v39  ;;  %v256_v46 = vsub.f32 %v240_v34, %v249_v39 }
 0x17d   : > { %v248_v40 = vpop.xlane.xlu0 %247 }
 0x17e   : > { %v250_v42 = vmul.f32 0.03125, %v248_v40 }
 0x180   : > { %v252_v43 = vsub.f32 %v250_v42, %v251_v41 }
 0x182   : > { %v253_v44 = vmax.f32 %v252_v43, 0.0 }
 0x184   : > { %v254_v45 = vadd.f32 1e-05, %v253_v44 }
 0x186   : > { %458 = vrsqrt.f32 %v254_v45 }
 0x190   : > { %v459_v47 = vpop.eup %458 }
 0x191   : > { %v257_v49 = vmul.f32 %v459_v47, %v256_v46 }
 0x193   : > { %v265_v51 = vmul.f32 %v380_v48, %v257_v49 }
 0x195   : > { %v273_v52 = vadd.f32 %v381_v50, %v265_v51 }
 0x197   : > { %274 = vst.msk [vmem:[%s719_s4] sm:$0xff] %vm213_vm0, %v273_v52 }
 0x198   : > { %503 = shalt.err (!%p500_p5)
}
 0x199   : > { %s504_s29 = scalar_lea.hbm %s745_s28, 128  ;;  %s508_s7 = scalar_lea.hbm %s794_s3, 256 }
 0x19a   : > { %p505_p8 = scmp.ne.s32.totalorder %s745_s28, %s504_s29  ;;  %p509_p1 = scmp.lt.u32.totalorder %s745_s28, %s794_s3 }
 0x19b   : > { %p510_p3 = scmp.lt.u32.totalorder %s508_s7, %s504_s29  ;;  %p512_p11 = scmp.lt.u32.totalorder %s504_s29, %s745_s28 }
 0x19c   : > { %p506_p9 = pnand %p505_p8, %p803_p12 }
 0x19d   : > { %p511_p6 = por %p510_p3, %p509_p1 }
 0x19e   : > { %p507_p0 = pneg %p506_p9 }
 0x19f   : > { %p513_p13 = por %p512_p11, %p511_p6 }
 0x1a1   : > { %p514_p7 = pnand %p513_p13, %p507_p0 }
 0x1a3   : > { %517 = shalt.err (!%p514_p7)
}
 0x1a4   : > { %388 = dma.vmem_to_hbm [thread:$0]  (%p803_p12), %s747_s22, 128, %s745_s28, %s276_s30  }
 0x1a5 PF: > { %s301_s11 = sand.u32 1, %s556_s12   ;;  %p804_p10 = scmp.ne.s32.totalorder %s799_s25, 0 }
 0x1a6   : > { %p805_p2 = scmp.ge.s32.totalorder %s568_s15, 2  ;;  %s302_s17 = scalar_lea.sflag [#allocation4], %s301_s11 }
 0x1a8   : > { %p395_p4 = pnand %p805_p2, %p804_p10 }
 0x1aa   : > { %551 = dma.done.wait (!%p395_p4), %s302_s17, 128  }
 0x1ab   : > { %553 = vsyncadd (!%p395_p4), %s302_s17, 4294967168  ;;  %p16_p5 = scmp.ge.s32.totalorder %s631_s18, 4   ;;  %s806_s12 = smov %s560_s13 }
 0x1ac   : > { %s807_s13 = smov %s564_s14  ;;  %s808_s14 = smov %s643_s21 }
 0x1ad   : > { %s809_s15 = smov %s631_s18  ;;  %18 = sbr.rel (!%p16_p5) target bundleno = 5 (0x5), region = 95 }
 0x1b4   :  { %307 = vsyncpa [#allocation3], 1 }
 0x1b5   :  { %309 = vsyncpa [#allocation3 + $0x1], 1 }
 0x1b6   :  { %310 = vsyncpa [#allocation4], 1 }
 0x1b7   :  { %312 = vsyncpa [#allocation4 + $0x1], 1 }

</bundles_post_ra>
